<compile_context>
chip_gen: v7x
topology: tpu7x:2x2x1
jax: 0.10.0
libtpu: 0.0.40
codegen_flags: <defaults>
</compile_context>

<pallas_src>
import functools
import math

import jax
import jax.numpy as jnp
from jax import lax
from jax.experimental import pallas as pl
from jax.experimental.pallas import tpu as pltpu


# ----------------------------------------------------------------------------
# Pallas kernel: sample-blocked horseshoe linear layer
# ----------------------------------------------------------------------------
def _horseshoe_kernel(x_ref, beta_ref, tau_ref, v_ref, bias_ref, o_ref,
                      *, s_blk, out_f, in_f):
    # x_ref:    (batch, in)            bf16, resident (same block every step)
    # beta_ref: (s_blk, out, in)       bf16, streamed per grid step (HBM-bound)
    # tau_ref:  (n_samples, in)        f32,  resident
    # v_ref:    (n_samples, 1)         f32,  resident
    # bias_ref: (grid, s_blk*out)      f32,  resident (pre-flattened in wrapper)
    # o_ref:    (1, batch, s_blk*out)  f32,  lane-dense output block
    g = pl.program_id(0)
    s0 = pl.multiple_of(g * s_blk, s_blk)

    # Per-sample scale tau*v for this block of samples (f32 elementwise).
    tau = tau_ref[pl.ds(s0, s_blk), :]                    # (s_blk, in)
    v = v_ref[pl.ds(s0, s_blk), :]                        # (s_blk, 1)
    scale = tau * v                                       # (s_blk, in)

    # Scale beta (VPU work hidden under the beta DMA) and flatten the samples
    # into the matmul N dimension. The reshape (s_blk, out, in)->(s_blk*out, in)
    # only collapses leading dims (lane dim unchanged), a layout no-op here.
    beta = beta_ref[...].astype(jnp.float32)              # (s_blk, out, in)
    w = (beta * scale[:, None, :]).reshape(s_blk * out_f, in_f)
    w = w.astype(jnp.bfloat16)                            # feed bf16 to the MXU

    # One large MXU contraction, no explicit transpose:
    # (batch, in) . (s_blk*out, in) over dim 1 of both -> (batch, s_blk*out)
    y = lax.dot_general(
        x_ref[...], w,
        dimension_numbers=(((1,), (1,)), ((), ())),
        preferred_element_type=jnp.float32)

    o_ref[0] = (y + bias_ref[pl.ds(g, 1), :]).astype(o_ref.dtype)


def _pick_s_block(n_samples, out_f):
    """Smallest divisor of n_samples giving a lane-dense (>=128) output block
    while keeping >=2 grid steps (megacore) when possible."""
    best = 1
    for d in range(1, n_samples + 1):
        if n_samples % d:
            continue
        if d * out_f > 4096:          # keep the per-step tile modest (VMEM)
            break
        best = d
        if d * out_f >= 128 and n_samples // d >= 2:
            return d
    return best


def horseshoe_forward(x, beta, log_tau, log_v, bias, *, s_block=None):
    """
    Args:
      x:       (batch, in_features)
      beta:    (n_samples, out, in)
      log_tau: (n_samples, in)
      log_v:   (n_samples, 1)
      bias:    (n_samples, out)
    Returns:
      (n_samples, batch, out) float32
    """
    n_samples, out_f, in_f = beta.shape
    batch = x.shape[0]
    if s_block is None:
        s_block = _pick_s_block(n_samples, out_f)
    assert n_samples % s_block == 0, "s_block must divide n_samples"
    grid = n_samples // s_block
    n_lane = s_block * out_f

    # HBM-bound on beta: stream beta (and x) as bf16; accumulate f32 on MXU.
    x_bf = x.astype(jnp.bfloat16)
    beta_bf = beta.astype(jnp.bfloat16)
    tau_f = log_tau.astype(jnp.float32)
    v_f = log_v.astype(jnp.float32)
    # Flatten bias per sample-block so the kernel avoids a sublane->lane reshape.
    bias_f = bias.astype(jnp.float32).reshape(grid, n_lane)

    kernel = functools.partial(_horseshoe_kernel,
                               s_blk=s_block, out_f=out_f, in_f=in_f)

    grid_spec = pltpu.PrefetchScalarGridSpec(
        num_scalar_prefetch=0,
        grid=(grid,),
        in_specs=[
            pl.BlockSpec((batch, in_f), lambda g: (0, 0)),              # x (resident)
            pl.BlockSpec((s_block, out_f, in_f), lambda g: (g, 0, 0)),  # beta block
            pl.BlockSpec((n_samples, in_f), lambda g: (0, 0)),          # log_tau (resident)
            pl.BlockSpec((n_samples, 1), lambda g: (0, 0)),             # log_v (resident)
            pl.BlockSpec((grid, n_lane), lambda g: (0, 0)),             # bias (resident)
        ],
        out_specs=pl.BlockSpec((1, batch, n_lane), lambda g: (g, 0, 0)),
    )

    # NOTE: at production sizes raise vmem_limit_bytes for bigger beta blocks
    # (and on v7x keep 2*(beta block + out block) + residents under ~48 MiB).
    out = pl.pallas_call(
        kernel,
        out_shape=jax.ShapeDtypeStruct((grid, batch, n_lane), jnp.float32),
        grid_spec=grid_spec,
        compiler_params=pltpu.CompilerParams(
            dimension_semantics=("parallel",)),
    )(x_bf, beta_bf, tau_f, v_f, bias_f)

    # (grid, batch, s_block*out) -> (n_samples, batch, out)
    out = out.reshape(grid, batch, s_block, out_f)
    out = out.transpose(0, 2, 1, 3).reshape(n_samples, batch, out_f)
    return out


# ----------------------------------------------------------------------------
# Parameter construction + reparameterized sampling (plain-JAX glue)
# ----------------------------------------------------------------------------
def init_params(key, in_features, out_features, rho_scale=-5.0,
                weight_cauchy_scale=1.0, global_cauchy_scale=1.0):
    k_beta, k_tau, k_v = jax.random.split(key, 3)

    # xavier_uniform_ on (out_features, in_features)
    bound = math.sqrt(6.0 / (in_features + out_features))
    beta_mu = jax.random.uniform(k_beta, (out_features, in_features),
                                 minval=-bound, maxval=bound, dtype=jnp.float32)
    beta_rho = jnp.full((out_features, in_features), rho_scale, jnp.float32)

    bias_mu = jnp.zeros((1, out_features), jnp.float32)
    bias_rho = jnp.full((1, out_features), rho_scale, jnp.float32)

    # log_tau_mean = log(HalfCauchy(scale=weight_cauchy_scale).sample(in_features))
    prior_lambda_rate = 1.0 / weight_cauchy_scale ** 2
    u = jax.random.uniform(k_tau, (in_features,), minval=1e-4, maxval=1.0 - 1e-4)
    hc_tau = (1.0 / jnp.sqrt(prior_lambda_rate)) * jnp.tan(0.5 * jnp.pi * u)
    log_tau_mean = jnp.log(hc_tau).astype(jnp.float32)
    log_tau_rho = jnp.full((in_features,), rho_scale, jnp.float32)

    # log_v_mean = log(HalfCauchy(scale=global_cauchy_scale).sample())
    prior_theta_rate = 1.0 / global_cauchy_scale ** 2
    u = jax.random.uniform(k_v, (1,), minval=1e-4, maxval=1.0 - 1e-4)
    hc_v = (1.0 / jnp.sqrt(prior_theta_rate)) * jnp.tan(0.5 * jnp.pi * u)
    log_v_mean = jnp.log(hc_v).astype(jnp.float32)
    log_v_rho = jnp.full((1,), rho_scale, jnp.float32)

    return dict(beta_mu=beta_mu, beta_rho=beta_rho,
                bias_mu=bias_mu, bias_rho=bias_rho,
                log_tau_mean=log_tau_mean, log_tau_rho=log_tau_rho,
                log_v_mean=log_v_mean, log_v_rho=log_v_rho)


def sample_posteriors(key, params, n_samples):
    """ParametrizedGaussian.sample(n_samples): mu + softplus(rho) * eps."""
    kb, kt, kv, kbi = jax.random.split(key, 4)

    def draw(k, mu, rho):
        eps = jax.random.normal(k, (n_samples,) + mu.shape, dtype=jnp.float32)
        return mu + jax.nn.softplus(rho) * eps   # numerically-stable softplus

    beta = draw(kb, params["beta_mu"], params["beta_rho"])        # (S, out, in)
    log_tau = draw(kt, params["log_tau_mean"], params["log_tau_rho"])  # (S, in)
    log_v = draw(kv, params["log_v_mean"], params["log_v_rho"])   # (S, 1)
    bias = draw(kbi, params["bias_mu"], params["bias_rho"])       # (S, 1, out)
    bias = bias.reshape(n_samples, -1)                            # (S, out)
    return beta, log_tau, log_v, bias


# TODO(synk): log_prior / log_variational_posterior / fixed_point_update are
# scalar KL bookkeeping with no tensor hot path; they stay plain JAX/torch-side.

# ----------------------------------------------------------------------------
# Main
# ----------------------------------------------------------------------------
if __name__ == "__main__":
    in_features = 128
    out_features = 32
    batch = 8
    n_samples = 8          # with s_block=4 -> grid of 2 (>=2 for megacore)

    root = jax.random.PRNGKey(0)
    k_params, k_sample, k_x = jax.random.split(root, 3)

    params = init_params(k_params, in_features, out_features)
    beta, log_tau, log_v, bias = sample_posteriors(k_sample, params, n_samples)
    x = jax.random.normal(k_x, (batch, in_features), dtype=jnp.float32)

    out = horseshoe_forward(x, beta, log_tau, log_v, bias, s_block=4)
    out = jax.block_until_ready(out)
    assert out.shape == (n_samples, batch, out_features)

    # Reference matching the kernel's numerics (bf16 streams, f32 scale,
    # bf16-rounded weight fed to the MXU, f32 accumulate), same math as
    # torch.einsum('bij,bkj->bik', x, beta*log_tau*log_v) + bias.
    x_q = x.astype(jnp.bfloat16).astype(jnp.float32)
    beta_q = beta.astype(jnp.bfloat16).astype(jnp.float32)
    scale = (log_tau * log_v)[:, None, :]                         # (S, 1, in)
    weight_q = (beta_q * scale).astype(jnp.bfloat16).astype(jnp.float32)
    ref = jnp.einsum('ij,skj->sik', x_q, weight_q) + bias[:, None, :]

    assert jnp.allclose(out, ref, atol=1e-2, rtol=1e-2), "mismatch vs reference"

    print("KERNEL_OK")
</pallas_src>

<mosaic_0001>
module attributes {stable_mosaic.version = 11 : i64} {
  func.func @_horseshoe_kernel(%arg0: i32, %arg1: memref<8x128xbf16, #tpu.memory_space<vmem>>, %arg2: memref<4x32x128xbf16, #tpu.memory_space<vmem>>, %arg3: memref<8x128xf32, #tpu.memory_space<vmem>>, %arg4: memref<8x1xf32, #tpu.memory_space<vmem>>, %arg5: memref<2x128xf32, #tpu.memory_space<vmem>>, %arg6: memref<1x8x128xf32, #tpu.memory_space<vmem>>) attributes {dimension_semantics = [#tpu.dimension_semantics<parallel>], iteration_bounds = array<i64: 2>, scalar_prefetch = 0 : i64, scratch_operands = 0 : i64, tpu.core_type = #tpu.core_type<tc>, window_params = [{pipeline_mode = #tpu.pipeline_mode<synchronous>, transform_indices = @transform_0, window_bounds = array<i64: 8, 128>}, {transform_indices = @transform_1, window_bounds = array<i64: 4, 32, 128>}, {pipeline_mode = #tpu.pipeline_mode<synchronous>, transform_indices = @transform_2, window_bounds = array<i64: 8, 128>}, {pipeline_mode = #tpu.pipeline_mode<synchronous>, transform_indices = @transform_3, window_bounds = array<i64: 8, 1>}, {pipeline_mode = #tpu.pipeline_mode<synchronous>, transform_indices = @transform_4, window_bounds = array<i64: 2, 128>}, {transform_indices = @transform_5, window_bounds = array<i64: 1, 8, 128>}]} {
    %c4_i32 = arith.constant 4 : i32
    %0 = arith.muli %arg0, %c4_i32 : i32
    %1 = tpu.assume_multiple %0, 4 : i32
    %2 = arith.index_cast %1 : i32 to index
    %c0 = arith.constant 0 : index
    %3 = vector.load %arg3[%2, %c0] : memref<8x128xf32, #tpu.memory_space<vmem>>, vector<4x128xf32>
    %4 = arith.index_cast %1 : i32 to index
    %c0_0 = arith.constant 0 : index
    %5 = vector.load %arg4[%4, %c0_0] : memref<8x1xf32, #tpu.memory_space<vmem>>, vector<4x1xf32>
    %6 = vector.broadcast %5 : vector<4x1xf32> to vector<4x128xf32>
    %7 = arith.mulf %3, %6 : vector<4x128xf32>
    %c0_1 = arith.constant 0 : index
    %c0_2 = arith.constant 0 : index
    %c0_3 = arith.constant 0 : index
    %8 = vector.load %arg2[%c0_1, %c0_2, %c0_3] : memref<4x32x128xbf16, #tpu.memory_space<vmem>>, vector<4x32x128xbf16>
    %9 = arith.extf %8 : vector<4x32x128xbf16> to vector<4x32x128xf32>
    %10 = vector.shape_cast %7 : vector<4x128xf32> to vector<4x1x128xf32>
    %11 = vector.broadcast %10 : vector<4x1x128xf32> to vector<4x32x128xf32>
    %12 = arith.mulf %9, %11 : vector<4x32x128xf32>
    %13 = vector.shape_cast %12 : vector<4x32x128xf32> to vector<128x128xf32>
    %14 = arith.truncf %13 : vector<128x128xf32> to vector<128x128xbf16>
    %c0_4 = arith.constant 0 : index
    %c0_5 = arith.constant 0 : index
    %15 = vector.load %arg1[%c0_4, %c0_5] : memref<8x128xbf16, #tpu.memory_space<vmem>>, vector<8x128xbf16>
    %cst = arith.constant dense<0.000000e+00> : vector<8x128xf32>
    %16 = tpu.matmul %15, %14, %cst {dimension_numbers = #tpu.dot_dimension_numbers<[1], [1], [0], [0], [0, 0, 1, 0], [], []>} : vector<8x128xbf16>, vector<128x128xbf16>, vector<8x128xf32> -> vector<8x128xf32>
    %17 = arith.index_cast %arg0 : i32 to index
    %c0_6 = arith.constant 0 : index
    %18 = vector.load %arg5[%17, %c0_6] : memref<2x128xf32, #tpu.memory_space<vmem>>, vector<1x128xf32>
    %19 = vector.broadcast %18 : vector<1x128xf32> to vector<8x128xf32>
    %20 = arith.addf %16, %19 : vector<8x128xf32>
    %c0_7 = arith.constant 0 : index
    %c0_8 = arith.constant 0 : index
    %c0_9 = arith.constant 0 : index
    %21 = vector.load %arg6[%c0_7, %c0_8, %c0_9] : memref<1x8x128xf32, #tpu.memory_space<vmem>>, vector<1x8x128xf32>
    %22 = vector.shape_cast %21 : vector<1x8x128xf32> to vector<8x128xf32>
    %23 = vector.shape_cast %20 : vector<8x128xf32> to vector<1x8x128xf32>
    tpu.vector_store %arg6[%c0_7, %c0_8, %c0_9], %23 {strides = array<i32>} : memref<1x8x128xf32, #tpu.memory_space<vmem>>, vector<1x8x128xf32>,
    return
  }
  func.func @transform_0(%arg0: i32) -> (i32, i32) {
    %c0_i32 = arith.constant 0 : i32
    %c0_i32_0 = arith.constant 0 : i32
    %c0_i32_1 = arith.constant 0 : i32
    return %c0_i32, %c0_i32_0 : i32, i32
  }
  func.func @transform_1(%arg0: i32) -> (i32, i32, i32) {
    %c0_i32 = arith.constant 0 : i32
    %c0_i32_0 = arith.constant 0 : i32
    %c0_i32_1 = arith.constant 0 : i32
    return %arg0, %c0_i32, %c0_i32_0 : i32, i32, i32
  }
  func.func @transform_2(%arg0: i32) -> (i32, i32) {
    %c0_i32 = arith.constant 0 : i32
    %c0_i32_0 = arith.constant 0 : i32
    %c0_i32_1 = arith.constant 0 : i32
    return %c0_i32, %c0_i32_0 : i32, i32
  }
  func.func @transform_3(%arg0: i32) -> (i32, i32) {
    %c0_i32 = arith.constant 0 : i32
    %c0_i32_0 = arith.constant 0 : i32
    %c0_i32_1 = arith.constant 0 : i32
    return %c0_i32, %c0_i32_0 : i32, i32
  }
  func.func @transform_4(%arg0: i32) -> (i32, i32) {
    %c0_i32 = arith.constant 0 : i32
    %c0_i32_0 = arith.constant 0 : i32
    %c0_i32_1 = arith.constant 0 : i32
    return %c0_i32, %c0_i32_0 : i32, i32
  }
  func.func @transform_5(%arg0: i32) -> (i32, i32, i32) {
    %c0_i32 = arith.constant 0 : i32
    %c0_i32_0 = arith.constant 0 : i32
    %c0_i32_1 = arith.constant 0 : i32
    return %arg0, %c0_i32, %c0_i32_0 : i32, i32, i32
  }
}

</mosaic_0001>

<bundles_post_ra>
// kernel: tpu_custom_call.1
= control target key start
LH: loop header
LB: loop body
LE: loop exit
PB: predicated region body
PF: predicated region fallthrough
CT: control target
= control target key end

     0   :  { %10 = vsyncpa [#allocation3], 0  ;;  %s964_s0 = inlined_call_operand.vmem [shape: bf16[8,128], index: 0, kind: input, shape index: {}]   ;;  %s965_s1 = inlined_call_operand.hbm [shape: bf16[8,32,128], index: 1, kind: input, shape index: {}]   ;;  %s966_s2 = inlined_call_operand.vmem [shape: f32[8,128], index: 2, kind: input, shape index: {}]   ;;  %s967_s3 = inlined_call_operand.vmem [shape: f32[8,1], index: 3, kind: input, shape index: {}]   ;;  %s968_s4 = inlined_call_operand.vmem [shape: f32[2,128], index: 4, kind: input, shape index: {}]   ;;  %s969_s5 = inlined_call_operand.hbm [shape: f32[2,8,128], index: 5, kind: output, shape index: {}]  }
   0x1   :  { %12 = vsyncpa [#allocation3 + $0x1], 0 }
   0x2   :  { %13 = vsyncpa [#allocation4], 0 }
   0x3   :  { %15 = vsyncpa [#allocation4 + $0x1], 0  ;;  %s770_s18 = smov 0   ;;  %s772_s19 = smov 0  }
   0x4   :  { %s774_s20 = smov 0   ;;  %s776_s21 = smov 0  }
   0x5 LB: > { %s791_s22 = sadd.s32 4294967295, %s730_s21   ;;  %s495_s23 = sadd.s32 4294967294, %s730_s21   ;;  %s730_s21 = sphi %s776_s21, %s982_s21   ;;  %s726_s20 = sphi %s774_s20, %s981_s20   ;;  %s722_s19 = sphi %s772_s19, %s980_s19   ;;  %s718_s18 = sphi %s770_s18, %s979_s18  }
   0x6   : > { %s795_s24 = sadd.s32 1, %s730_s21   ;;  %s49_s25 = sadd.s32 1, %s726_s20 }
   0x7   : > { %s46_s26 = ssub.s32 %s730_s21, %s795_s24  ;;  %p56_p0 = scmp.ne.s32.totalorder %s726_s20, %s722_s19 }
   0x8   : > { %p47_p1 = scmp.eq.s32.totalorder %s46_s26, 0  ;;  %p57_p2 = scmp.eq.s32.totalorder %s730_s21, 0 }
   0x9   : > { %p62_p3 = scmp.ne.s32.totalorder %s722_s19, %s718_s18  ;;  %p63_p4 = scmp.eq.s32.totalorder %s791_s22, 0 }
   0xa   : > { %s807_s27 = scalar_select %p47_p1, %s726_s20, %s49_s25  }
   0xb   : > { %p809_p5 = por %p57_p2, %p56_p0  ;;  %p813_p6 = por %p63_p4, %p62_p3 }
   0xc   : > { %p149_p7 = scmp.eq.s32.totalorder %s791_s22, 1  ;;  %p155_p8 = scmp.eq.s32.totalorder %s495_s23, 1 }
   0xd   : > { %p593_p10 = scmp.lt.s32.totalorder %s730_s21, 2  ;;  %s187_s7 = sand.u32 1, %s726_s20  }
   0xe   : > { %p820_p11 = por %p149_p7, %p56_p0  ;;  %p824_p12 = por %p155_p8, %p62_p3 }
   0xf   : > { %s512_s8 = sshll.u32 %s730_s21, 10  ;;  %s498_s9 = sshll.u32 %s187_s7, 6 }
  0x10   : > { %s973_s30 = scalar_select %p820_p11, 1, 0 }
  0x11   : > { %s974_s6 = scalar_select %p824_p12, 1, 0 }
  0x12   : > { %s833_s12 = scalar_lea.hbm %s965_s1, %s512_s8  ;;  %s191_s13 = scalar_lea.vmem [#allocation2], %s498_s9 }
  0x13   : > { %s199_s14 = sshll.u32 %s191_s13, 4  ;;  %p837_p13 = pnand %p593_p10, %p809_p5  ;;  %s841_s14 = int_to_ptr.vmem [resolvable:$true] %s199_s14 }
  0x14   : > { %s843_s16 = scalar_lea.sflag [#allocation3], %s187_s7  ;;  %s634_s17 = scalar_lea.hbm %s833_s12, 1024 }
  0x15   : > { %p635_p0 = scmp.ne.s32.totalorder %s833_s12, %s634_s17  ;;  %p636_p1 = pneg %p837_p13 }
  0x16   : > { %s639_s26 = scalar_lea.hbm %s965_s1, 2048  ;;  %p640_p4 = scmp.lt.u32.totalorder %s833_s12, %s965_s1 }
  0x17   : > { %p637_p2 = pnand %p636_p1, %p635_p0  ;;  %p641_p5 = scmp.lt.u32.totalorder %s639_s26, %s634_s17 }
  0x18   : > { %p643_p8 = scmp.lt.u32.totalorder %s634_s17, %s833_s12 }
  0x19   : > { %p638_p3 = pneg %p637_p2  ;;  %p642_p7 = por %p641_p5, %p640_p4 }
  0x1b   : > { %p644_p10 = por %p643_p8, %p642_p7 }
  0x1d   : > { %p645_p9 = pnand %p644_p10, %p638_p3 }
  0x1f   : > { %648 = shalt.err (!%p645_p9)
}
  0x20   : > { %s649_s7 = scalar_lea.vmem %s841_s14, 1024  ;;  %s732_s9 = smov [#allocation2]  }
  0x21   : > { %p650_p0 = scmp.ne.s32.totalorder %s841_s14, %s649_s7  ;;  %s654_s10 = sshll.u32 %s732_s9, 4  ;;  %s655_s10 = int_to_ptr.vmem [resolvable:$false] %s654_s10 }
  0x22   : > { %s656_s11 = scalar_lea.vmem %s655_s10, 2048  ;;  %p657_p11 = scmp.lt.s32.totalorder %s841_s14, %s655_s10 }
  0x23   : > { %p652_p2 = pnand %p650_p0, %p636_p1  ;;  %p658_p4 = scmp.lt.s32.totalorder %s656_s11, %s649_s7 }
  0x25   : > { %p653_p12 = pneg %p652_p2  ;;  %p659_p5 = por %p658_p4, %p657_p11 }
  0x27   : > { %p660_p7 = pnand %p659_p5, %p653_p12 }
  0x29   : > { %663 = shalt.err (!%p660_p7)
}
  0x2a   : > { %s733_s13 = smov 64   ;;  %s734_s17 = smov 4  }
  0x2b   : > { %588 = dma.hbm_to_vmem [thread:$0]  (!%p837_p13), %s833_s12, 1024, %s841_s14, %s843_s16, %s733_s13, %s733_s13, %s734_s17  }
  0x2c   : > { %p502_p9 = scmp.ge.s32.totalorder %s730_s21, 1  ;;  %p207_p1 = scmp.lt.s32.totalorder %s730_s21, 3 }
  0x2e   : > { %p208_p3 = pnand %p502_p9, %p207_p1 }
  0x2f   : > { %s874_s23 = sand.u32 (!%p208_p3), 1, %s722_s19  }
  0x30   : > { %211 = sbr.rel (%p208_p3) target bundleno = 490 (0x1ea), region = 40  ;;  %s503_s25 = sshll.u32 (!%p208_p3), %s874_s23, 6 }
  0x31   : > { %s214_s26 = scalar_lea.sflag (!%p208_p3), [#allocation3], %s874_s23  ;;  %s878_s28 = scalar_lea.vmem (!%p208_p3), [#allocation2], %s503_s25 }
  0x37   : > { %709 = dma.done.wait (%p813_p6), %s214_s26, 1024  }
  0x38   : > { %711 = vsyncadd (%p813_p6), %s214_s26, 4294966272  ;;  %v735_v0 = vmov 0   ;;  %s505_s12 = sshll.u32 %s791_s22, 2  ;;  %v736_v2 = vmov 0.0   ;;  %vm737_vm0 = vmmov 0   ;;  %v293_v5 = vlaneseq  ;;  %v514_v12 = vld [vmem:[%s878_s28] sm:$0xff]   ;;  %s359_s25 = scalar_lea.vmem %s968_s4, %s791_s22 }
  0x39   : > { %633 = vset.pattern.permute.xlu0 %v735_v0  ;;  %s249_s16 = scalar_lea.vmem %s967_s3, %s505_s12  ;;  %561 = vmatprep.subr.bf16.mxu0 %v736_v2  ;;  %v738_v3 = vmov 1966171168   ;;  %s247_s7 = scalar_lea.vmem %s966_s2, %s505_s12  ;;  %v515_v16 = vunpack.c.l.bf16 %v514_v12  ;;  %v516_v17 = vunpack.c.h.bf16 %v514_v12  ;;  %v545_v20 = vld [vmem:[%s878_s28 + $0x8] sm:$0xff]   ;;  %v546_v29 = vld [vmem:[%s878_s28 + $0x10] sm:$0xff]   ;;  %v547_v36 = vld [vmem:[%s878_s28 + $0x18] sm:$0xff]  }
  0x3a   : > { %v250_v1 = vld [vmem:[%s249_s16] sm:$0xf]  ;;  %577 = vmatprep.mubr.msk.bf16.mxu0 %vm737_vm0, %v736_v2  ;;  %v291_v4 = vunpack.c.l.s4 %v738_v3  ;;  %v294_v7 = vshrl.u32 %v293_v5, 7  ;;  %v519_v24 = vunpack.c.l.bf16 %v545_v20  ;;  %v520_v25 = vunpack.c.h.bf16 %v545_v20  ;;  %v549_v50 = vld [vmem:[%s878_s28 + $0x28] sm:$0xff]   ;;  %v550_v57 = vld [vmem:[%s878_s28 + $0x30] sm:$0xff]   ;;  %s504_s11 = sshll.u32 %s874_s23, 3 }
  0x3b   : > { %253 = vperm.xlu0 %633, %v250_v1   ;;  %v248_v8 = vld [vmem:[%s247_s7] sm:$0xf]  ;;  %v523_v32 = vunpack.c.l.bf16 %v546_v29  ;;  %v524_v33 = vunpack.c.h.bf16 %v546_v29  ;;  %v527_v38 = vunpack.c.l.bf16 %v547_v36  ;;  %v528_v39 = vunpack.c.h.bf16 %v547_v36  ;;  %v551_v0 = vld [vmem:[%s878_s28 + $0x38] sm:$0xff]   ;;  %s508_s26 = sshll.u32 %s791_s22, 7  ;;  %s407_s29 = scalar_lea.sflag [#allocation4], %s874_s23 }
  0x3c   : > { %v292_v6 = vunpack.c.0.s8 %v291_v4  ;;  %v316_v13 = vsub.s32 0, %v294_v7  ;;  %v548_v43 = vld [vmem:[%s878_s28 + $0x20] sm:$0xff]   ;;  %v535_v52 = vunpack.c.l.bf16 %v549_v50  ;;  %v536_v53 = vunpack.c.h.bf16 %v549_v50  ;;  %s243_s28 = scalar_lea.vmem [#allocation5], %s504_s11  ;;  %s920_s16 = scalar_lea.hbm %s969_s5, %s508_s26 }
  0x3d   : > { %v531_v46 = vunpack.c.l.bf16 %v548_v43  ;;  %v532_v47 = vunpack.c.h.bf16 %v548_v43  ;;  %v539_v60 = vunpack.c.l.bf16 %v550_v57  ;;  %v540_v61 = vunpack.c.h.bf16 %v550_v57  ;;  %s420_s12 = sshll.u32 %s243_s28, 4  ;;  %p976_p11 = scmp.ne.s32.totalorder %s973_s30, 0  ;;  %s922_s12 = int_to_ptr.vmem [resolvable:$true] %s420_s12 }
  0x3e   : > { %v295_v9 = vsub.s32 %v292_v6, %v294_v7  ;;  %v543_v3 = vunpack.c.l.bf16 %v551_v0  ;;  %v544_v4 = vunpack.c.h.bf16 %v551_v0  ;;  %s664_s22 = scalar_lea.vmem %s922_s12, 128  ;;  %s739_s8 = smov [#allocation5]  }
  0x3f   : > { %p665_p6 = scmp.ne.s32.totalorder %s922_s12, %s664_s22  ;;  %s668_s7 = sshll.u32 %s739_s8, 4  ;;  %s669_s7 = int_to_ptr.vmem [resolvable:$false] %s668_s7 }
  0x40   : > { %s670_s9 = scalar_lea.vmem %s669_s7, 256  ;;  %p671_p8 = scmp.lt.s32.totalorder %s922_s12, %s669_s7 }
  0x41   : > { %p666_p12 = pnand %p665_p6, %p976_p11  ;;  %p672_p10 = scmp.lt.s32.totalorder %s670_s9, %s664_s22 }
  0x43   : > { %p667_p13 = pneg %p666_p12  ;;  %p673_p0 = por %p672_p10, %p671_p8 }
  0x45   : > { %p674_p2 = pnand %p673_p0, %p667_p13 }
  0xba   : > { %v254_v10 = vpop.permute.xlu0 %253 }
  0xbb   : > { %v256_v11 = vmul.f32 %v254_v10, %v248_v8  ;;  %v358_v8 = vld [vmem:[%s964_s0] sm:$0xf] }
  0xbd   : > { %v296_v14 = vrot.slane %v256_v11, %v295_v9 }
  0xbf   : > { %v304_v15 = vrot.slane %v296_v14, %v295_v9  ;;  %v297_v22 = vcombine.high %v296_v14, %v296_v14 }
  0xc1   : > { %v317_v18 = vrot.slane %v304_v15, %v316_v13  ;;  %v311_v26 = vrot.slane %v297_v22, %v295_v9  ;;  %v312_v40 = vcombine.high %v304_v15, %v304_v15  ;;  %v506_v9 = vld [vmem:[%s359_s25] ss:$0 sm:$0xff] }
  0xc3   : > { %v334_v19 = vmul.f32 %v515_v16, %v317_v18  ;;  %v335_v21 = vmul.f32 %v516_v17, %v317_v18  ;;  %v336_v27 = vmul.f32 %v519_v24, %v317_v18  ;;  %v337_v28 = vmul.f32 %v520_v25, %v317_v18 }
  0xc4   : > { %v321_v30 = vrot.slane %v311_v26, %v316_v13  ;;  %v325_v44 = vrot.slane %v312_v40, %v316_v13  ;;  %v313_v54 = vcombine.high %v311_v26, %v311_v26 }
  0xc5   : > { %v350_v23 = vpack.c.bf16 %v335_v21, %v334_v19  ;;  %v351_v31 = vpack.c.bf16 %v337_v28, %v336_v27 }
  0xc6   : > { %v338_v34 = vmul.f32 %v523_v32, %v321_v30  ;;  %v339_v35 = vmul.f32 %v524_v33, %v321_v30  ;;  %v340_v41 = vmul.f32 %v527_v38, %v321_v30  ;;  %v341_v42 = vmul.f32 %v528_v39, %v321_v30 }
  0xc7   : > { %562 = vmatpush3.bf16.xpose.msra.mxu0 %v350_v23  ;;  %v342_v48 = vmul.f32 %v531_v46, %v325_v44  ;;  %v343_v49 = vmul.f32 %v532_v47, %v325_v44  ;;  %v344_v55 = vmul.f32 %v535_v52, %v325_v44  ;;  %v345_v56 = vmul.f32 %v536_v53, %v325_v44 }
  0xc8   : > { %563 = vmatprep.subr.bf16.mxu0 %v736_v2  ;;  %v352_v37 = vpack.c.bf16 %v339_v35, %v338_v34  ;;  %v353_v45 = vpack.c.bf16 %v341_v42, %v340_v41  ;;  %v329_v58 = vrot.slane %v313_v54, %v316_v13 }
  0xc9   : > { %v354_v51 = vpack.c.bf16 %v343_v49, %v342_v48  ;;  %v355_v59 = vpack.c.bf16 %v345_v56, %v344_v55 }
  0xca   : > { %v346_v62 = vmul.f32 %v539_v60, %v329_v58  ;;  %v347_v63 = vmul.f32 %v540_v61, %v329_v58  ;;  %v348_v5 = vmul.f32 %v543_v3, %v329_v58  ;;  %v349_v6 = vmul.f32 %v544_v4, %v329_v58 }
  0xcc   : > { %v356_v1 = vpack.c.bf16 %v347_v63, %v346_v62  ;;  %v357_v7 = vpack.c.bf16 %v349_v6, %v348_v5 }
  0xcf   : > { %564 = vmatpush3.bf16.xpose.msra.mxu0 %v351_v31 }
  0xd0   : > { %565 = vmatprep.subr.bf16.mxu0 %v736_v2 }
  0xd7   : > { %566 = vmatpush3.bf16.xpose.msra.mxu0 %v352_v37 }
  0xd8   : > { %567 = vmatprep.subr.bf16.mxu0 %v736_v2 }
  0xdf   : > { %568 = vmatpush3.bf16.xpose.msra.mxu0 %v353_v45 }
  0xe0   : > { %569 = vmatprep.subr.bf16.mxu0 %v736_v2 }
  0xe7   : > { %570 = vmatpush3.bf16.xpose.msra.mxu0 %v354_v51 }
  0xe8   : > { %571 = vmatprep.subr.bf16.mxu0 %v736_v2 }
  0xef   : > { %572 = vmatpush3.bf16.xpose.msra.mxu0 %v355_v59 }
  0xf0   : > { %573 = vmatprep.subr.bf16.mxu0 %v736_v2 }
  0xf7   : > { %574 = vmatpush3.bf16.xpose.msra.mxu0 %v356_v1 }
  0xf8   : > { %575 = vmatprep.subr.bf16.mxu0 %v736_v2 }
  0xff   : > { %576 = vmatpush3.bf16.xpose.msra.mxu0 %v357_v7 }
 0x106   : > { %578 = vmatmul.mubr.bf16.vlgmr.msra.gmra.mrb[0].mxu0 %v358_v8 }
 0x1d9   : > { %v399_v2 = vpop.f32.mrb[0].mxu0 }
 0x1da   : > { %v400_v10 = vadd.f32 %v506_v9, %v399_v2  ;;  %v579_v11 = vpop.f32.mrb[1].mxu0 }
 0x1db   : > { %v402_v12 = vpop.f32.mrb[2].mxu0 }
 0x1dc   : > { %405 = vst [vmem:[%s243_s28] sm:$0xff] %v400_v10  ;;  %v580_v13 = vpop.f32.mrb[3].mxu0 }
 0x1dd   : > { %677 = shalt.err (!%p674_p2)
}
 0x1de   : > { %s678_s23 = scalar_lea.hbm %s920_s16, 128  ;;  %s682_s13 = scalar_lea.hbm %s969_s5, 256 }
 0x1df   : > { %p679_p4 = scmp.ne.s32.totalorder %s920_s16, %s678_s23  ;;  %p683_p9 = scmp.lt.u32.totalorder %s920_s16, %s969_s5 }
 0x1e0   : > { %p684_p1 = scmp.lt.u32.totalorder %s682_s13, %s678_s23  ;;  %p686_p6 = scmp.lt.u32.totalorder %s678_s23, %s920_s16 }
 0x1e1   : > { %p680_p5 = pnand %p679_p4, %p976_p11 }
 0x1e2   : > { %p685_p3 = por %p684_p1, %p683_p9 }
 0x1e3   : > { %p681_p7 = pneg %p680_p5 }
 0x1e4   : > { %p687_p12 = por %p686_p6, %p685_p3 }
 0x1e6   : > { %p688_p13 = pnand %p687_p12, %p681_p7 }
 0x1e8   : > { %691 = shalt.err (!%p688_p13)
}
 0x1e9   : > { %583 = dma.vmem_to_hbm [thread:$0]  (%p976_p11), %s922_s12, 128, %s920_s16, %s407_s29  }
 0x1ea PF: > { %s432_s26 = sand.u32 1, %s718_s18   ;;  %p977_p8 = scmp.ne.s32.totalorder %s974_s6, 0 }
 0x1eb   : > { %p978_p10 = scmp.ge.s32.totalorder %s730_s21, 2  ;;  %s433_s28 = scalar_lea.sflag [#allocation4], %s432_s26 }
 0x1ed   : > { %p590_p0 = pnand %p978_p10, %p977_p8 }
 0x1ef   : > { %713 = dma.done.wait (!%p590_p0), %s433_s28, 128  }
 0x1f0   : > { %715 = vsyncadd (!%p590_p0), %s433_s28, 4294967168  ;;  %p18_p2 = scmp.ge.s32.totalorder %s795_s24, 4   ;;  %s979_s18 = smov %s722_s19 }
 0x1f1   : > { %s980_s19 = smov %s726_s20  ;;  %s981_s20 = smov %s807_s27 }
 0x1f2   : > { %s982_s21 = smov %s795_s24  ;;  %20 = sbr.rel (!%p18_p2) target bundleno = 5 (0x5), region = 88 }
 0x1f9   :  { %438 = vsyncpa [#allocation3], 1 }
 0x1fa   :  { %440 = vsyncpa [#allocation3 + $0x1], 1 }
 0x1fb   :  { %441 = vsyncpa [#allocation4], 1 }
 0x1fc   :  { %443 = vsyncpa [#allocation4 + $0x1], 1 }

</bundles_post_ra>
